<compile_context>
chip_gen: v7x
topology: tpu7x:2x2x1
jax: 0.10.0
libtpu: 0.0.40
codegen_flags: <defaults>
</compile_context>

<pallas_src>
import functools

import jax
import jax.numpy as jnp
from jax.experimental import pallas as pl
from jax.experimental.pallas import tpu as pltpu


def _round_up(x, m):
    return ((x + m - 1) // m) * m


def _choose_tiles(rows, hw, itemsize):
    """Pick (TR, TK): TR multiple of 8, TK multiple of 128, ~4 MiB/buffer."""
    TR = min(_round_up(rows, 8), 512)
    budget_bytes = 4 * 1024 * 1024  # per (double-buffered) input buffer
    max_tk = max(128, (budget_bytes // (TR * itemsize)) // 128 * 128)
    TK = min(_round_up(hw, 128), max_tk)
    return TR, TK


def _gap_kernel(x_ref, o_ref, acc_ref, *, inv_hw):
    # x_ref: (TR, TK) input tile, o_ref: (TR, 1), acc_ref: (TR, 1) f32 scratch.
    k = pl.program_id(1)

    @pl.when(k == 0)
    def _():
        acc_ref[...] = jnp.zeros_like(acc_ref)

    x = x_ref[...].astype(jnp.float32)
    tr, tk = x_ref.shape
    if tk % 128 == 0 and tk > 128:
        # VALU-first: sum the lane-aligned 128-wide chunks elementwise, then a
        # single cross-lane (XLU) reduction per row.
        xs = x.reshape(tr, tk // 128, 128)
        partial = jnp.sum(jnp.sum(xs, axis=1), axis=-1, keepdims=True)
    else:
        partial = jnp.sum(x, axis=-1, keepdims=True)
    acc_ref[...] += partial

    @pl.when(k == pl.num_programs(1) - 1)
    def _():
        o_ref[...] = (acc_ref[...] * inv_hw).astype(o_ref.dtype)


def global_avg_pool2d(x):
    """x: (N, C, H, W) -> (N, C, 1, 1), mean over H and W (NCHW avg pool)."""
    N, C, H, W = x.shape
    rows = N * C
    hw = H * W
    itemsize = jnp.dtype(x.dtype).itemsize

    x2d = x.reshape(rows, hw)

    TR, TK = _choose_tiles(rows, hw, itemsize)
    rows_p = _round_up(rows, TR)
    hw_p = _round_up(hw, TK)
    if rows_p != rows or hw_p != hw:
        # Zero-pad: padded columns contribute 0 to the sum (we divide by the
        # true hw); padded rows are sliced off below.
        x2d = jnp.pad(x2d, ((0, rows_p - rows), (0, hw_p - hw)))

    grid = (rows_p // TR, hw_p // TK)  # reduction (hw) axis last

    kernel = functools.partial(_gap_kernel, inv_hw=1.0 / float(hw))

    out2d = pl.pallas_call(
        kernel,
        out_shape=jax.ShapeDtypeStruct((rows_p, 1), x.dtype),
        grid=grid,
        in_specs=[pl.BlockSpec((TR, TK), lambda i, k: (i, k))],
        # Same output block across the hw axis -> accumulator pattern.
        out_specs=pl.BlockSpec((TR, 1), lambda i, k: (i, 0)),
        scratch_shapes=[pltpu.VMEM((TR, 1), jnp.float32)],
        compiler_params=pltpu.CompilerParams(
            dimension_semantics=("parallel", "arbitrary"),
        ),
        cost_estimate=pl.CostEstimate(
            flops=rows * hw,
            transcendentals=0,
            bytes_accessed=rows * hw * itemsize + rows * itemsize,
        ),
    )(x2d)

    return out2d[:rows].reshape(N, C, 1, 1)


if __name__ == "__main__":
    key = jax.random.PRNGKey(0)
    N, C, H, W = 2, 4, 16, 16
    x = jax.random.normal(key, (N, C, H, W), dtype=jnp.float32)

    out = global_avg_pool2d(x)
    out = jax.block_until_ready(out)

    # Reference mirroring F.avg_pool2d(x, kernel_size=(H, W)).
    ref = jnp.mean(x, axis=(2, 3), keepdims=True)
    assert out.shape == (N, C, 1, 1), out.shape
    assert jnp.allclose(out, ref, atol=1e-5, rtol=1e-5)

    print("KERNEL_OK")
</pallas_src>

<mosaic_0001>
module attributes {stable_mosaic.version = 11 : i64} {
  func.func @_gap_kernel(%arg0: i32, %arg1: i32, %arg2: memref<8x256xf32, #tpu.memory_space<vmem>>, %arg3: memref<8x1xf32, #tpu.memory_space<vmem>>, %arg4: memref<8x1xf32, #tpu.memory_space<vmem>>) attributes {dimension_semantics = [#tpu.dimension_semantics<parallel>, #tpu.dimension_semantics<arbitrary>], iteration_bounds = array<i64: 1, 1>, scalar_prefetch = 0 : i64, scratch_operands = 1 : i64, tpu.core_type = #tpu.core_type<tc>, window_params = [{transform_indices = @transform_0, window_bounds = array<i64: 8, 256>}, {transform_indices = @transform_1, window_bounds = array<i64: 8, 1>}]} {
    %c0_i32 = arith.constant 0 : i32
    %0 = arith.cmpi eq, %arg1, %c0_i32 : i32
    %1 = arith.extui %0 : i1 to i32
    %c0_i32_0 = arith.constant 0 : i32
    %2 = arith.cmpi ne, %1, %c0_i32_0 : i32
    scf.if %2 {
      %cst_9 = arith.constant 0.000000e+00 : f32
      %14 = vector.broadcast %cst_9 : f32 to vector<8x1xf32>
      %c0_10 = arith.constant 0 : index
      %c0_11 = arith.constant 0 : index
      %15 = vector.load %arg4[%c0_10, %c0_11] : memref<8x1xf32, #tpu.memory_space<vmem>>, vector<8x1xf32>
      tpu.vector_store %arg4[%c0_10, %c0_11], %14 {strides = array<i32>} : memref<8x1xf32, #tpu.memory_space<vmem>>, vector<8x1xf32>,
    } else {
    }
    %c0 = arith.constant 0 : index
    %c0_1 = arith.constant 0 : index
    %3 = vector.load %arg2[%c0, %c0_1] : memref<8x256xf32, #tpu.memory_space<vmem>>, vector<8x256xf32>
    %4 = vector.shape_cast %3 : vector<8x256xf32> to vector<8x2x128xf32>
    %cst = arith.constant dense<0.000000e+00> : vector<8x128xf32>
    %5 = vector.multi_reduction <add>, %4, %cst [1] : vector<8x2x128xf32> to vector<8x128xf32>
    %cst_2 = arith.constant dense<0.000000e+00> : vector<8xf32>
    %6 = vector.multi_reduction <add>, %5, %cst_2 [1] : vector<8x128xf32> to vector<8xf32>
    %7 = vector.shape_cast %6 : vector<8xf32> to vector<8x1xf32>
    %c0_3 = arith.constant 0 : index
    %c0_4 = arith.constant 0 : index
    %8 = vector.load %arg4[%c0_3, %c0_4] : memref<8x1xf32, #tpu.memory_space<vmem>>, vector<8x1xf32>
    %9 = arith.addf %8, %7 : vector<8x1xf32>
    %c0_5 = arith.constant 0 : index
    %c0_6 = arith.constant 0 : index
    %10 = vector.load %arg4[%c0_5, %c0_6] : memref<8x1xf32, #tpu.memory_space<vmem>>, vector<8x1xf32>
    tpu.vector_store %arg4[%c0_5, %c0_6], %9 {strides = array<i32>} : memref<8x1xf32, #tpu.memory_space<vmem>>, vector<8x1xf32>,
    %c0_i32_7 = arith.constant 0 : i32
    %11 = arith.cmpi eq, %arg1, %c0_i32_7 : i32
    %12 = arith.extui %11 : i1 to i32
    %c0_i32_8 = arith.constant 0 : i32
    %13 = arith.cmpi ne, %12, %c0_i32_8 : i32
    scf.if %13 {
      %c0_9 = arith.constant 0 : index
      %c0_10 = arith.constant 0 : index
      %14 = vector.load %arg4[%c0_9, %c0_10] : memref<8x1xf32, #tpu.memory_space<vmem>>, vector<8x1xf32>
      %cst_11 = arith.constant 3.906250e-03 : f32
      %15 = vector.broadcast %cst_11 : f32 to vector<8x1xf32>
      %16 = arith.mulf %14, %15 : vector<8x1xf32>
      %c0_12 = arith.constant 0 : index
      %c0_13 = arith.constant 0 : index
      %17 = vector.load %arg3[%c0_12, %c0_13] : memref<8x1xf32, #tpu.memory_space<vmem>>, vector<8x1xf32>
      tpu.vector_store %arg3[%c0_12, %c0_13], %16 {strides = array<i32>} : memref<8x1xf32, #tpu.memory_space<vmem>>, vector<8x1xf32>,
    } else {
    }
    return
  }
  func.func @transform_0(%arg0: i32, %arg1: i32) -> (i32, i32) {
    %c0_i32 = arith.constant 0 : i32
    return %arg0, %arg1 : i32, i32
  }
  func.func @transform_1(%arg0: i32, %arg1: i32) -> (i32, i32) {
    %c0_i32 = arith.constant 0 : i32
    %c0_i32_0 = arith.constant 0 : i32
    return %arg0, %c0_i32 : i32, i32
  }
}

</mosaic_0001>

<bundles_post_ra>
// kernel: tpu_custom_call.1
= control target key start
LH: loop header
LB: loop body
LE: loop exit
PB: predicated region body
PF: predicated region fallthrough
CT: control target
= control target key end

     0   :  { %6 = vsyncpa [#allocation4], 0  ;;  %s219_s6 = smov [#allocation3]   ;;  %s261_s0 = inlined_call_operand.hbm [shape: f32[8,256], index: 0, kind: input, shape index: {}]   ;;  %s262_s1 = inlined_call_operand.vmem [shape: f32[8,1], index: 1, kind: output, shape index: {}]  }
   0x1   :  { %s13_s7 = sshll.u32 %s219_s6, 4  ;;  %s195_s10 = scalar_lea.hbm %s261_s0, 256  ;;  %s14_s7 = int_to_ptr.vmem [resolvable:$true] %s13_s7 }
   0x2   :  { %p196_p0 = scmp.ne.s32.totalorder %s261_s0, %s195_s10  ;;  %p199_p1 = scmp.lt.u32.totalorder %s195_s10, %s261_s0 }
   0x4   :  { %p201_p2 = pnand %p199_p1, %p196_p0 }
   0x6   :  { %204 = shalt.err (!%p201_p2)
}
   0x7   :  { %s205_s15 = scalar_lea.vmem %s14_s7, 256  ;;  %p210_p4 = scmp.lt.s32.totalorder %s14_s7, %s14_s7 }
   0x8   :  { %p206_p3 = scmp.ne.s32.totalorder %s14_s7, %s205_s15  ;;  %p211_p5 = scmp.lt.s32.totalorder %s205_s15, %s205_s15 }
   0xa   :  { %p212_p6 = por %p211_p5, %p210_p4 }
   0xc   :  { %p213_p7 = pnand %p212_p6, %p206_p3 }
   0xe   :  { %216 = shalt.err (!%p213_p7)
}
   0xf   :  { %16 = dma.hbm_to_vmem [thread:$0]  %s261_s0, 256, %s14_s7, [#allocation4]  }
  0x10   :  { %217 = dma.done.wait [#allocation4], 256  }
  0x11   :  { %218 = vsyncadd [#allocation4], 4294967040  ;;  %vm24_vm0 = vcmask 7168   ;;  %v32_v0 = vlaneseq  ;;  %v220_v1 = vmov 0.0   ;;  %v221_v2 = vmov 1983009808  }
  0x12   :  { %25 = vst.msk [vmem:[#allocation2] sm:$0xff] %vm24_vm0, %v220_v1  ;;  %v30_v3 = vunpack.c.l.s4 %v221_v2  ;;  %v222_v5 = vmov 1934713408   ;;  %v26_v10 = vld [vmem:[#allocation3] sm:$0xff]  ;;  %v27_v11 = vld [vmem:[#allocation3 + $0x8] sm:$0xff]  ;;  %vm94_vm1 = vcmask 1041408  }
  0x13   :  { %v33_v4 = vshrl.u32 %v32_v0, 7  ;;  %v61_v6 = vunpack.c.l.s4 %v222_v5  ;;  %v28_v13 = vcombine.high %v26_v10, %v220_v1  ;;  %v43_v15 = vcombine.high %v27_v11, %v220_v1 }
  0x14   :  { %v31_v7 = vunpack.c.0.s8 %v30_v3  ;;  %vm159_vm2 = vcmask 1041409   ;;  %vm161_vm3 = vcmask 1042434   ;;  %vm163_vm4 = vcmask 1043459  }
  0x15   :  { %v62_v8 = vunpack.c.0.s8 %v61_v6  ;;  %vm165_vm5 = vcmask 1044484   ;;  %vm167_vm6 = vcmask 1045509   ;;  %vm169_vm7 = vcmask 1046534  }
  0x16   :  { %v34_v9 = vsub.s32 %v31_v7, %v33_v4  ;;  %vm171_vm8 = vcmask 1047559  }
  0x17   :  { %v65_v12 = vsub.s32 %v62_v8, %v33_v4 }
  0x18   :  { %v35_v14 = vrot.slane %v26_v10, %v34_v9  ;;  %v50_v16 = vrot.slane %v27_v11, %v34_v9  ;;  %v42_v17 = vrot.slane %v28_v13, %v34_v9  ;;  %v57_v18 = vrot.slane %v43_v15, %v34_v9 }
  0x1a   :  { %v58_v19 = vcombine.low %v35_v14, %v50_v16  ;;  %v59_v20 = vcombine.high %v35_v14, %v50_v16  ;;  %v74_v23 = vcombine.low %v42_v17, %v57_v18  ;;  %v75_v24 = vcombine.high %v42_v17, %v57_v18 }
  0x1c   :  { %v66_v21 = vrot.slane %v58_v19, %v65_v12  ;;  %v73_v22 = vrot.slane %v59_v20, %v65_v12  ;;  %v82_v25 = vrot.slane %v74_v23, %v65_v12  ;;  %v89_v26 = vrot.slane %v75_v24, %v65_v12 }
  0x1e   :  { %v90_v27 = vcombine.high %v66_v21, %v220_v1  ;;  %v91_v28 = vcombine.high %v73_v22, %v220_v1  ;;  %v95_v29 = vsel %vm94_vm1, %v66_v21, 0.0  ;;  %v109_v30 = vsel %vm94_vm1, %v73_v22, 0.0 }
  0x1f   :  { %v92_v31 = vcombine.high %v82_v25, %v220_v1  ;;  %v93_v32 = vcombine.high %v89_v26, %v220_v1  ;;  %v96_v33 = vrot.slane %v95_v29, 4  ;;  %v110_v36 = vrot.slane %v109_v30, 4 }
  0x20   :  { %v102_v34 = vsel %vm94_vm1, %v90_v27, 0.0  ;;  %v116_v37 = vsel %vm94_vm1, %v91_v28, 0.0  ;;  %v123_v38 = vsel %vm94_vm1, %v82_v25, 0.0  ;;  %v137_v46 = vsel %vm94_vm1, %v89_v26, 0.0 }
  0x21   :  { %v103_v35 = vrot.slane %v102_v34, 4  ;;  %v97_v39 = vadd.f32 %v96_v33, %v95_v29  ;;  %v117_v40 = vrot.slane %v116_v37, 4  ;;  %v124_v41 = vrot.slane %v123_v38, 4 }
  0x22   :  { %v130_v42 = vsel %vm94_vm1, %v92_v31, 0.0  ;;  %v111_v44 = vadd.f32 %v110_v36, %v109_v30  ;;  %v138_v50 = vrot.slane %v137_v46, 4  ;;  %v144_v54 = vsel %vm94_vm1, %v93_v32, 0.0  ;;  %v176_v30 = vld [vmem:[#allocation2] sm:$0xff] }
  0x23   :  { %v104_v43 = vadd.f32 %v103_v35, %v102_v34  ;;  %v131_v45 = vrot.slane %v130_v42, 4  ;;  %v98_v47 = vrot.slane %v97_v39, 2  ;;  %v118_v48 = vadd.f32 %v117_v40, %v116_v37 }
  0x24   :  { %v125_v49 = vadd.f32 %v124_v41, %v123_v38  ;;  %v112_v52 = vrot.slane %v111_v44, 2  ;;  %v139_v58 = vadd.f32 %v138_v50, %v137_v46  ;;  %v145_v62 = vrot.slane %v144_v54, 4 }
  0x25   :  { %v105_v51 = vrot.slane %v104_v43, 2  ;;  %v132_v53 = vadd.f32 %v131_v45, %v130_v42  ;;  %v99_v55 = vadd.f32 %v98_v47, %v97_v39  ;;  %v119_v56 = vrot.slane %v118_v48, 2 }
  0x26   :  { %v126_v57 = vrot.slane %v125_v49, 2  ;;  %v113_v60 = vadd.f32 %v112_v52, %v111_v44  ;;  %v140_v2 = vrot.slane %v139_v58, 2  ;;  %v146_v6 = vadd.f32 %v145_v62, %v144_v54 }
  0x27   :  { %v106_v59 = vadd.f32 %v105_v51, %v104_v43  ;;  %v133_v61 = vrot.slane %v132_v53, 2  ;;  %v100_v63 = vrot.slane %v99_v55, 1  ;;  %v120_v0 = vadd.f32 %v119_v56, %v118_v48 }
  0x28   :  { %v127_v1 = vadd.f32 %v126_v57, %v125_v49  ;;  %v114_v4 = vrot.slane %v113_v60, 1  ;;  %v141_v10 = vadd.f32 %v140_v2, %v139_v58  ;;  %v147_v14 = vrot.slane %v146_v6, 2 }
  0x29   :  { %v107_v3 = vrot.slane %v106_v59, 1  ;;  %v134_v5 = vadd.f32 %v133_v61, %v132_v53  ;;  %v101_v7 = vadd.f32 %v100_v63, %v99_v55  ;;  %v121_v8 = vrot.slane %v120_v0, 1 }
  0x2a   :  { %v128_v9 = vrot.slane %v127_v1, 1  ;;  %v115_v12 = vadd.f32 %v114_v4, %v113_v60  ;;  %v142_v17 = vrot.slane %v141_v10, 1  ;;  %v148_v19 = vadd.f32 %v147_v14, %v146_v6 }
  0x2b   :  { %v108_v11 = vadd.f32 %v107_v3, %v106_v59  ;;  %v135_v13 = vrot.slane %v134_v5, 1  ;;  %v122_v15 = vadd.f32 %v121_v8, %v120_v0 }
  0x2c   :  { %v129_v16 = vadd.f32 %v128_v9, %v127_v1  ;;  %v143_v21 = vadd.f32 %v142_v17, %v141_v10  ;;  %v149_v23 = vrot.slane %v148_v19, 1 }
  0x2d   :  { %v136_v18 = vadd.f32 %v135_v13, %v134_v5  ;;  %v160_v20 = vsel %vm159_vm2, %v108_v11, %v101_v7 }
  0x2e   :  { %v162_v22 = vsel %vm161_vm3, %v115_v12, %v160_v20  ;;  %v150_v26 = vadd.f32 %v149_v23, %v148_v19 }
  0x2f   :  { %v164_v24 = vsel %vm163_vm4, %v122_v15, %v162_v22 }
  0x30   :  { %v166_v25 = vsel %vm165_vm5, %v129_v16, %v164_v24 }
  0x31   :  { %v168_v27 = vsel %vm167_vm6, %v136_v18, %v166_v25 }
  0x32   :  { %v170_v28 = vsel %vm169_vm7, %v143_v21, %v168_v27 }
  0x33   :  { %v172_v29 = vsel %vm171_vm8, %v150_v26, %v170_v28 }
  0x34   :  { %174 = vadd.xlane.f32.xlu0 %v172_v29 }
  0xc1   :  { %v175_v31 = vpop.xlane.xlu0 %174 }
  0xc2   :  { %v177_v32 = vadd.f32 %v176_v30, %v175_v31 }
  0xc4   :  { %179 = vst.msk [vmem:[#allocation2] sm:$0xff] %vm24_vm0, %v177_v32 }
  0xcb   :  { %v183_v33 = vld [vmem:[#allocation2] sm:$0xff] }
  0xcc   :  { %v184_v34 = vmul.f32 0.00390625, %v183_v33 }
  0xce   :  { %185 = vst.msk [vmem:[%s262_s1] sm:$0xff] %vm24_vm0, %v184_v34 }
  0xcf   :  { %190 = vsyncpa [#allocation4], 1 }

</bundles_post_ra>
